<compile_context>
chip_gen: v7x
topology: tpu7x:2x2x1
jax: 0.10.0
libtpu: 0.0.40
codegen_flags: <defaults>
</compile_context>

<pallas_src>
import functools

import numpy as np
import jax
import jax.numpy as jnp
from jax.experimental import pallas as pl
from jax.experimental.pallas import tpu as pltpu


_BF16 = jnp.bfloat16
_F32 = jnp.float32
_VMEM_LIMIT = 48 * 1024 * 1024     # safe on v5e / v6e (128 MiB) and v7x (64 MiB)


# ---------------------------------------------------------------------------
# tiling helpers
# ---------------------------------------------------------------------------
def _round_up(x, m):
    return (x + m - 1) // m * m


def _choose_m(M):
    """Pad M to a 256-multiple (v6e/v7x MXU height); pick TM <= 1024 keeping >=2
    M-blocks when possible so v7x can shard the parallel axis over its 2 TCs."""
    Mp = _round_up(max(M, 1), 256)
    if Mp <= 256:
        return Mp, Mp
    for tm in (1024, 768, 512, 256):
        if tm <= Mp // 2 and Mp % tm == 0:
            return Mp, tm
    return Mp, 256


def _choose_k(Kp):
    """Kp is already a multiple of 128; pick the largest TK <= 1024 dividing it."""
    for tk in range(min(1024, Kp), 0, -128):
        if Kp % tk == 0:
            return tk
    return 128


# ---------------------------------------------------------------------------
# Pallas kernels: tiled matmul with fused row-scale / col-shift / activation
# ---------------------------------------------------------------------------
def _epilogue(y, r, b, act, slope):
    y = y * r + b
    if act == "relu":
        y = jnp.maximum(y, 0.0)
    elif act == "leaky":
        y = jnp.where(y >= 0.0, y, y * slope)
    return y


def _mm_kernel_multi(x_ref, w_ref, b_ref, r_ref, o_ref, acc_ref, *, act, slope):
    @pl.when(pl.program_id(2) == 0)
    def _():
        acc_ref[...] = jnp.zeros_like(acc_ref)

    acc_ref[...] += jnp.dot(x_ref[...], w_ref[...],
                            preferred_element_type=jnp.float32)

    @pl.when(pl.program_id(2) == pl.num_programs(2) - 1)
    def _():
        y = _epilogue(acc_ref[...], r_ref[...], b_ref[...], act, slope)
        o_ref[...] = y.astype(o_ref.dtype)


def _mm_kernel_single(x_ref, w_ref, b_ref, r_ref, o_ref, *, act, slope):
    y = jnp.dot(x_ref[...], w_ref[...], preferred_element_type=jnp.float32)
    o_ref[...] = _epilogue(y, r_ref[...], b_ref[...], act, slope).astype(o_ref.dtype)


def _fused_matmul(x, w, b, r, n_real, act, slope, out_dtype):
    """x: (M, Kp) bf16 patches (K already padded to w's K), w: (Kp, Np) bf16 with BN
    scale folded, b: (1, Np) f32 shift, r: (M, 1) f32 row scale -> (M, n_real)."""
    M, Kp = x.shape
    Kp2, Np = w.shape
    assert Kp == Kp2 and Kp % 128 == 0 and Np % 128 == 0
    Mp, TM = _choose_m(M)
    TK = _choose_k(Kp)
    TN = Np

    if Mp != M:
        x = jnp.pad(x, ((0, Mp - M), (0, 0)))
        r = jnp.pad(r, ((0, Mp - M), (0, 0)))

    ksteps = Kp // TK
    if ksteps == 1:
        out = pl.pallas_call(
            functools.partial(_mm_kernel_single, act=act, slope=slope),
            out_shape=jax.ShapeDtypeStruct((Mp, Np), out_dtype),
            grid_spec=pltpu.PrefetchScalarGridSpec(
                num_scalar_prefetch=0,
                grid=(Mp // TM, Np // TN),
                in_specs=[
                    pl.BlockSpec((TM, TK), lambda i, j: (i, 0)),
                    pl.BlockSpec((TK, TN), lambda i, j: (0, j)),
                    pl.BlockSpec((1, TN), lambda i, j: (0, j)),
                    pl.BlockSpec((TM, 1), lambda i, j: (i, 0)),
                ],
                out_specs=pl.BlockSpec((TM, TN), lambda i, j: (i, j)),
            ),
            compiler_params=pltpu.CompilerParams(
                dimension_semantics=("parallel", "parallel"),
                vmem_limit_bytes=_VMEM_LIMIT),
        )(x, w, b, r)
    else:
        out = pl.pallas_call(
            functools.partial(_mm_kernel_multi, act=act, slope=slope),
            out_shape=jax.ShapeDtypeStruct((Mp, Np), out_dtype),
            grid_spec=pltpu.PrefetchScalarGridSpec(
                num_scalar_prefetch=0,
                grid=(Mp // TM, Np // TN, ksteps),
                in_specs=[
                    pl.BlockSpec((TM, TK), lambda i, j, k: (i, k)),
                    pl.BlockSpec((TK, TN), lambda i, j, k: (k, j)),
                    pl.BlockSpec((1, TN), lambda i, j, k: (0, j)),
                    pl.BlockSpec((TM, 1), lambda i, j, k: (i, 0)),
                ],
                out_specs=pl.BlockSpec((TM, TN), lambda i, j, k: (i, j)),
                scratch_shapes=[pltpu.VMEM((TM, TN), jnp.float32)],
            ),
            compiler_params=pltpu.CompilerParams(
                dimension_semantics=("parallel", "parallel", "arbitrary"),
                vmem_limit_bytes=_VMEM_LIMIT),
        )(x, w, b, r)

    if (Mp, Np) != (M, n_real):
        out = out[:M, :n_real]
    return out


# ---------------------------------------------------------------------------
# conv lowering (im2col -> fused Pallas matmul)
# ---------------------------------------------------------------------------
def _extract_patches(x, kh, kw, stride, padding, dilation, k_pad):
    """im2col in (i, j, cin) tap order. The K zero-pad is fused into the concatenate
    so the padded (.., Kp) array is materialized exactly once (in bf16)."""
    n, h, w, _ = x.shape
    if padding:
        x = jnp.pad(x, ((0, 0), (padding, padding), (padding, padding), (0, 0)))
    ho = (h + 2 * padding - dilation * (kh - 1) - 1) // stride + 1
    wo = (w + 2 * padding - dilation * (kw - 1) - 1) // stride + 1
    cols = []
    for i in range(kh):
        for j in range(kw):
            cols.append(x[:, i * dilation: i * dilation + (ho - 1) * stride + 1: stride,
                            j * dilation: j * dilation + (wo - 1) * stride + 1: stride, :])
    if k_pad:
        cols.append(jnp.zeros((n, ho, wo, k_pad), x.dtype))
    return jnp.concatenate(cols, axis=-1), ho, wo


def _conv_core(x, w, shift, cout, row_scale, *, kh, kw, stride, padding, dilation,
               act, slope, out_dtype):
    x = x.astype(_BF16)
    n, _, _, cin = x.shape
    Kp = w.shape[0]
    k_pad = Kp - kh * kw * cin
    assert k_pad >= 0
    patches, ho, wo = _extract_patches(x, kh, kw, stride, padding, dilation, k_pad)
    M = n * ho * wo
    flat = patches.reshape(M, Kp)
    if row_scale is None:
        rs = jnp.ones((M, 1), _F32)
    else:
        rs = row_scale.reshape(M, 1).astype(_F32)
    out = _fused_matmul(flat, w, shift, rs, cout, act, slope, out_dtype)
    return out.reshape(n, ho, wo, cout)


@functools.partial(jax.jit, static_argnames=(
    "cout", "kh", "kw", "stride", "padding", "dilation", "act", "slope", "out_dtype"))
def conv2d(x, w, shift, *, cout, kh, kw, stride=1, padding=0, dilation=1,
           act="none", slope=0.01, out_dtype=_BF16):
    """x: NHWC. w: (Kp, Np) bf16 pre-padded with BN scale folded, shift: (1, Np) f32."""
    return _conv_core(x, w, shift, cout, None, kh=kh, kw=kw, stride=stride,
                      padding=padding, dilation=dilation, act=act, slope=slope,
                      out_dtype=out_dtype)


@functools.partial(jax.jit, static_argnames=(
    "cout", "kh", "kw", "stride", "padding", "act", "slope", "out_dtype"))
def partial_conv(x, mask, w, shift, *, cout, kh, kw, stride, padding,
                 act="none", slope=0.01, out_dtype=_BF16):
    """PartialConv2d (multi_channel=True, bias=False) + (folded) BN + activation.
    The mask-update conv (all-ones weight) is a cheap window sum; its ratio is fused
    into the matmul epilogue as the per-row scale (kept in fp32)."""
    cin = x.shape[-1]
    msum = jax.lax.reduce_window(
        jnp.sum(mask.astype(_F32), axis=-1, keepdims=True),
        0.0, jax.lax.add,
        window_dimensions=(1, kh, kw, 1),
        window_strides=(1, stride, stride, 1),
        padding=((0, 0), (padding, padding), (padding, padding), (0, 0)))
    winsize = float(cin * kh * kw)
    ratio = winsize / (msum + 1e-8)
    upd = jnp.clip(msum, 0.0, 1.0)
    ratio = ratio * upd                                   # (n, ho, wo, 1)

    masked = x.astype(_BF16) * mask.astype(_BF16)
    out = _conv_core(masked, w, shift, cout, ratio, kh=kh, kw=kw, stride=stride,
                     padding=padding, dilation=1, act=act, slope=slope,
                     out_dtype=out_dtype)
    new_mask = jnp.broadcast_to(upd, out.shape).astype(_F32)
    return out, new_mask


@functools.partial(jax.jit, static_argnames=("cout", "act", "slope", "out_dtype"))
def deconv2x(x, w_phases, shift, *, cout, act="none", slope=0.01, out_dtype=_BF16):
    """ConvTranspose2d(kernel=4, stride=2, pad=1) (+ folded BN + activation) computed
    as four 2x2 sub-pixel-phase convs on the un-dilated input, then interleaved.
    Avoids the zero-stuffed dilated im2col (~4x fewer MACs and bytes)."""
    x = x.astype(_BF16)
    n, h, w, _ = x.shape
    xp = jnp.pad(x, ((0, 0), (1, 1), (1, 1), (0, 0)))
    ph = {}
    for p in (0, 1):
        for q in (0, 1):
            sub = xp[:, p:p + h + 1, q:q + w + 1, :]
            ph[(p, q)] = _conv_core(sub, w_phases[p * 2 + q], shift, cout, None,
                                    kh=2, kw=2, stride=1, padding=0, dilation=1,
                                    act=act, slope=slope, out_dtype=out_dtype)
    row0 = jnp.stack([ph[(0, 0)], ph[(0, 1)]], axis=3).reshape(n, h, 2 * w, cout)
    row1 = jnp.stack([ph[(1, 0)], ph[(1, 1)]], axis=3).reshape(n, h, 2 * w, cout)
    return jnp.stack([row0, row1], axis=2).reshape(n, 2 * h, 2 * w, cout)


# convenience wrappers taking a layer dict ----------------------------------
def _c(x, layer, **kw):
    return conv2d(x, layer["w"], layer["b"], cout=layer["cout"], **kw)


def _pc(x, m, layer, **kw):
    return partial_conv(x, m, layer["w"], layer["b"], cout=layer["cout"], **kw)


def _dc(x, layer, **kw):
    return deconv2x(x, layer["w"], layer["b"], cout=layer["cout"], **kw)


# ---------------------------------------------------------------------------
# Parameters (deterministic numpy RNG; BN eval-mode scale folded + pre-padded)
# ---------------------------------------------------------------------------
_BN_EPS = 1e-5
_BN_SCALE = 1.0 / (1.0 + _BN_EPS) ** 0.5     # gamma=1, running_var=1, eval mode


def _pack(wm, cout, bn):
    K, N = wm.shape
    if bn:
        wm = wm * _BN_SCALE
    Kp, Np = _round_up(K, 128), _round_up(N, 128)
    wpad = np.zeros((Kp, Np), np.float32)
    wpad[:K, :N] = wm
    return jnp.asarray(wpad, _BF16), jnp.zeros((1, Np), _F32), cout


def make_params(seed=42):
    rng = np.random.default_rng(seed)

    def conv_w(cout, cin, kh, kw, bn=True):
        w = rng.standard_normal((cout, cin, kh, kw), dtype=np.float32)
        w *= (2.0 / (cin * kh * kw)) ** 0.5
        wm = np.transpose(w, (2, 3, 1, 0)).reshape(kh * kw * cin, cout)
        wj, bj, n = _pack(wm, cout, bn)
        return {"w": wj, "b": bj, "cout": n}

    def convT_w(cin, cout, bn=True):
        # PyTorch ConvTranspose2d(k=4, s=2, p=1) weight: (cin, cout, 4, 4).
        w = rng.standard_normal((cin, cout, 4, 4), dtype=np.float32)
        w *= (2.0 / (cin * 4 * 4)) ** 0.5
        wflip = np.transpose(w[:, :, ::-1, ::-1], (2, 3, 0, 1))   # (kh, kw, cin, cout)
        phases = []
        shift = None
        for p in (0, 1):
            for q in (0, 1):
                sub = wflip[p::2, q::2]                           # (2, 2, cin, cout)
                wm = sub.reshape(4 * cin, cout)
                wj, bj, _ = _pack(wm, cout, bn)
                phases.append(wj)
                shift = bj
        return {"w": tuple(phases), "b": shift, "cout": cout}

    p = {}
    p["Pconv1"] = conv_w(64, 4, 7, 7, bn=True)       # bn1 folded
    p["Pconv2"] = conv_w(64, 64, 7, 7, bn=True)      # bn20 folded
    p["Pconv21"] = conv_w(64, 64, 7, 7, bn=False)    # no BN between Pconv21/22
    p["Pconv22"] = conv_w(64, 64, 7, 7, bn=True)     # bn2 folded

    rfr = {}
    in_ch = 64
    for i in range(1, 4):
        out_ch = in_ch * 2
        rfr[f"enc{i}"] = conv_w(out_ch, in_ch, 3, 3)
        in_ch = out_ch
    for i in range(4, 7):
        rfr[f"enc{i}"] = conv_w(in_ch, in_ch, 3, 3)
    for i in (5, 4):
        rfr[f"dec{i}"] = conv_w(in_ch, 2 * in_ch, 3, 3)
    rfr["dec3"] = convT_w(1024, 512)
    rfr["dec2"] = convT_w(768, 256)
    rfr["dec1"] = convT_w(384, 64)
    p["rfr"] = rfr

    p["conv31"] = conv_w(448, 448, 3, 3)
    p["conv32"] = conv_w(896, 448, 3, 3)
    p["conv33"] = conv_w(896, 896, 3, 3)
    p["conv34"] = conv_w(896, 896, 3, 3)
    p["conv35"] = conv_w(896, 896, 3, 3)
    p["conv36"] = conv_w(896, 896, 3, 3)
    p["dconv37"] = convT_w(896, 896)
    p["dconv38"] = convT_w(896, 448)
    p["dconv39"] = convT_w(448, 256)
    p["conv40"] = conv_w(128, 256, 3, 3)
    p["conv41"] = conv_w(64, 128, 3, 3)
    p["Tconv"] = convT_w(64, 64)
    p["tail1"] = conv_w(32, 68, 3, 3, bn=False)
    # Bottleneck(32, 8)
    p["t2_conv1"] = conv_w(8, 32, 1, 1)
    p["t2_conv2"] = conv_w(8, 8, 3, 3)
    p["t2_conv3"] = conv_w(32, 8, 1, 1)
    p["out"] = conv_w(1, 64, 3, 3, bn=False)
    return p


# ---------------------------------------------------------------------------
# RFRModule forward (BN + activation fused in each conv's epilogue)
# ---------------------------------------------------------------------------
def rfr_forward(rp, x, mask):
    del mask  # attention module (which consumes it) not available -> identity
    h1 = _c(x,  rp["enc1"], kh=3, kw=3, stride=2, padding=1, act="relu")
    h2 = _c(h1, rp["enc2"], kh=3, kw=3, stride=2, padding=1, act="relu")
    h3 = _c(h2, rp["enc3"], kh=3, kw=3, stride=2, padding=1, act="relu")
    h4 = _c(h3, rp["enc4"], kh=3, kw=3, stride=1, padding=2, dilation=2, act="relu")
    h5 = _c(h4, rp["enc5"], kh=3, kw=3, stride=1, padding=2, dilation=2, act="relu")
    h6 = _c(h5, rp["enc6"], kh=3, kw=3, stride=1, padding=2, dilation=2, act="relu")

    y = _c(jnp.concatenate([h6, h5], -1), rp["dec5"],
           kh=3, kw=3, stride=1, padding=2, dilation=2, act="leaky", slope=0.2)
    y = _c(jnp.concatenate([y, h4], -1), rp["dec4"],
           kh=3, kw=3, stride=1, padding=2, dilation=2, act="leaky", slope=0.2)
    y = _dc(jnp.concatenate([y, h3], -1), rp["dec3"], act="leaky", slope=0.2)
    # TODO(synk): AttentionModule (self.att(h, mask)) source not provided -> identity.
    y = _dc(jnp.concatenate([y, h2], -1), rp["dec2"], act="leaky", slope=0.2)
    y = _dc(jnp.concatenate([y, h1], -1), rp["dec1"], act="leaky", slope=0.2)
    return y


# ---------------------------------------------------------------------------
# RFRNet forward
# ---------------------------------------------------------------------------
def rfrnet_forward(p, in_image_nchw, mask_nchw):
    img = jnp.transpose(in_image_nchw, (0, 2, 3, 1)).astype(_F32)
    msk = jnp.transpose(mask_nchw, (0, 2, 3, 1)).astype(_F32)

    x1, m1 = _pc(img, msk, p["Pconv1"], kh=7, kw=7, stride=2, padding=3, act="relu")
    x1, m1 = _pc(x1, m1, p["Pconv2"], kh=7, kw=7, stride=1, padding=3, act="relu")

    x2, m2 = x1, m1
    feats, masks = [x2], [m2]
    for _ in range(6):
        x2, m2 = _pc(x2, m2, p["Pconv21"], kh=7, kw=7, stride=1, padding=3, act="none")
        x2, m2 = _pc(x2, m2, p["Pconv22"], kh=7, kw=7, stride=1, padding=3,
                     act="leaky", slope=0.01)
        x2 = rfr_forward(p["rfr"], x2, m2[..., 0:1])
        x2 = x2 * m2.astype(x2.dtype)
        feats.append(x2)
        masks.append(m2)

    x3s = jnp.stack(feats, axis=-1)                      # (n, h, w, 64, 7)
    m3s = jnp.stack(masks, axis=-1).astype(x3s.dtype)
    x3s = x3s * m3s
    n, h, w, c, t = x3s.shape
    x3 = x3s.reshape(n, h, w, c * t)                     # channel = c*7 + t (torch .view)
    m3_last = masks[-1]                                  # == m3[:, :, -1, :, :]

    x3 = _c(x3, p["conv31"], kh=3, kw=3, stride=2, padding=1, act="leaky", slope=0.01)
    x3 = _c(x3, p["conv32"], kh=3, kw=3, stride=2, padding=1, act="leaky", slope=0.01)
    x3 = _c(x3, p["conv33"], kh=3, kw=3, stride=2, padding=1, act="leaky", slope=0.01)
    x3 = _c(x3, p["conv34"], kh=3, kw=3, stride=1, padding=1, act="leaky", slope=0.01)
    x3 = _c(x3, p["conv35"], kh=3, kw=3, stride=1, padding=1, act="leaky", slope=0.01)
    x3 = _c(x3, p["conv36"], kh=3, kw=3, stride=1, padding=1, act="leaky", slope=0.01)
    x3 = _dc(x3, p["dconv37"], act="leaky", slope=0.01)
    x3 = _dc(x3, p["dconv38"], act="leaky", slope=0.01)
    x3 = _dc(x3, p["dconv39"], act="leaky", slope=0.01)
    x3 = _c(x3, p["conv40"], kh=3, kw=3, stride=1, padding=1, act="leaky", slope=0.01)
    x3 = _c(x3, p["conv41"], kh=3, kw=3, stride=1, padding=1, act="leaky", slope=0.01)

    x4 = _dc(x3, p["Tconv"], act="leaky", slope=0.01)
    m4 = jnp.repeat(jnp.repeat(m3_last, 2, axis=1), 2, axis=2)   # nearest x2

    x5_in = jnp.concatenate([img.astype(_BF16), x4], axis=-1)
    m5 = jnp.concatenate([msk, m4], axis=-1)
    x5, _ = _pc(x5_in, m5, p["tail1"], kh=3, kw=3, stride=1, padding=1,
                act="leaky", slope=0.01)

    # Bottleneck(32, 8)
    out = _c(x5, p["t2_conv1"], kh=1, kw=1, stride=1, padding=0, act="relu")
    out = _c(out, p["t2_conv2"], kh=3, kw=3, stride=1, padding=1, act="relu")
    out = _c(out, p["t2_conv3"], kh=1, kw=1, stride=1, padding=0, act="none")
    x6 = jnp.maximum(out + x5, 0.0)

    x6 = jnp.concatenate([x5, x6], axis=-1)
    output = _c(x6, p["out"], kh=3, kw=3, stride=1, padding=1, act="none",
                out_dtype=_F32)
    return jnp.transpose(output, (0, 3, 1, 2)), None


if __name__ == "__main__":
    # Small smoke-test shapes (batch=1, 4 channels, 32x32).  The original network is
    # written for 256x256 inputs (hard-coded view); the generalized reshape above makes
    # the same computation valid at any square spatial size divisible by 16.
    key = jax.random.PRNGKey(0)
    k_img, k_msk = jax.random.split(key)
    in_image = jax.random.normal(k_img, (1, 4, 32, 32), jnp.float32)
    mask = (jax.random.uniform(k_msk, (1, 4, 32, 32)) > 0.25).astype(jnp.float32)

    params = make_params()
    out, _ = rfrnet_forward(params, in_image, mask)
    out = jax.block_until_ready(out)
    assert out.shape == (1, 1, 32, 32)
    assert bool(jnp.all(jnp.isfinite(out)))
    print("KERNEL_OK")
</pallas_src>

<mosaic_0001>
module attributes {stable_mosaic.version = 11 : i64} {
  func.func @_mm_kernel_single(%arg0: i32, %arg1: i32, %arg2: memref<256x256xbf16, #tpu.memory_space<vmem>>, %arg3: memref<256x128xbf16, #tpu.memory_space<vmem>>, %arg4: memref<1x128xf32, #tpu.memory_space<vmem>>, %arg5: memref<256x1xf32, #tpu.memory_space<vmem>>, %arg6: memref<256x128xbf16, #tpu.memory_space<vmem>>) attributes {dimension_semantics = [#tpu.dimension_semantics<parallel>, #tpu.dimension_semantics<parallel>], iteration_bounds = array<i64: 1, 1>, scalar_prefetch = 0 : i64, scratch_operands = 0 : i64, tpu.core_type = #tpu.core_type<tc>, window_params = [{transform_indices = @transform_0, window_bounds = array<i64: 256, 256>}, {transform_indices = @transform_1, window_bounds = array<i64: 256, 128>}, {transform_indices = @transform_2, window_bounds = array<i64: 1, 128>}, {transform_indices = @transform_3, window_bounds = array<i64: 256, 1>}, {transform_indices = @transform_4, window_bounds = array<i64: 256, 128>}]} {
    %c0 = arith.constant 0 : index
    %c0_0 = arith.constant 0 : index
    %0 = vector.load %arg2[%c0, %c0_0] : memref<256x256xbf16, #tpu.memory_space<vmem>>, vector<256x256xbf16>
    %c0_1 = arith.constant 0 : index
    %c0_2 = arith.constant 0 : index
    %1 = vector.load %arg3[%c0_1, %c0_2] : memref<256x128xbf16, #tpu.memory_space<vmem>>, vector<256x128xbf16>
    %cst = arith.constant dense<0.000000e+00> : vector<256x128xf32>
    %2 = tpu.matmul %0, %1, %cst {dimension_numbers = #tpu.dot_dimension_numbers<[1], [0], [0], [1], [0, 0, 1, 1], [], []>} : vector<256x256xbf16>, vector<256x128xbf16>, vector<256x128xf32> -> vector<256x128xf32>
    %c0_3 = arith.constant 0 : index
    %c0_4 = arith.constant 0 : index
    %3 = vector.load %arg5[%c0_3, %c0_4] : memref<256x1xf32, #tpu.memory_space<vmem>>, vector<256x1xf32>
    %c0_5 = arith.constant 0 : index
    %c0_6 = arith.constant 0 : index
    %4 = vector.load %arg4[%c0_5, %c0_6] : memref<1x128xf32, #tpu.memory_space<vmem>>, vector<1x128xf32>
    %5 = vector.broadcast %3 : vector<256x1xf32> to vector<256x128xf32>
    %6 = arith.mulf %2, %5 : vector<256x128xf32>
    %7 = vector.broadcast %4 : vector<1x128xf32> to vector<256x128xf32>
    %8 = arith.addf %6, %7 : vector<256x128xf32>
    %cst_7 = arith.constant 0.000000e+00 : f32
    %9 = vector.broadcast %cst_7 : f32 to vector<256x128xf32>
    %10 = arith.maximumf %8, %9 : vector<256x128xf32>
    %11 = arith.truncf %10 : vector<256x128xf32> to vector<256x128xbf16>
    %c0_8 = arith.constant 0 : index
    %c0_9 = arith.constant 0 : index
    %12 = vector.load %arg6[%c0_8, %c0_9] : memref<256x128xbf16, #tpu.memory_space<vmem>>, vector<256x128xbf16>
    tpu.vector_store %arg6[%c0_8, %c0_9], %11 {strides = array<i32>} : memref<256x128xbf16, #tpu.memory_space<vmem>>, vector<256x128xbf16>,
    return
  }
  func.func @transform_0(%arg0: i32, %arg1: i32) -> (i32, i32) {
    %c0_i32 = arith.constant 0 : i32
    %c0_i32_0 = arith.constant 0 : i32
    return %arg0, %c0_i32 : i32, i32
  }
  func.func @transform_1(%arg0: i32, %arg1: i32) -> (i32, i32) {
    %c0_i32 = arith.constant 0 : i32
    %c0_i32_0 = arith.constant 0 : i32
    return %c0_i32, %arg1 : i32, i32
  }
  func.func @transform_2(%arg0: i32, %arg1: i32) -> (i32, i32) {
    %c0_i32 = arith.constant 0 : i32
    %c0_i32_0 = arith.constant 0 : i32
    return %c0_i32, %arg1 : i32, i32
  }
  func.func @transform_3(%arg0: i32, %arg1: i32) -> (i32, i32) {
    %c0_i32 = arith.constant 0 : i32
    %c0_i32_0 = arith.constant 0 : i32
    return %arg0, %c0_i32 : i32, i32
  }
  func.func @transform_4(%arg0: i32, %arg1: i32) -> (i32, i32) {
    %c0_i32 = arith.constant 0 : i32
    return %arg0, %arg1 : i32, i32
  }
}

</mosaic_0001>

<bundles_post_ra>
// kernel: partial_conv.1
= control target key start
LH: loop header
LB: loop body
LE: loop exit
PB: predicated region body
PF: predicated region fallthrough
CT: control target
= control target key end

     0   :  { %v1401_v2 = vmov 0   ;;  %s1758_s0 = inlined_call_operand.vmem [shape: bf16[256,256], index: 0, kind: input, shape index: {}]   ;;  %s1759_s1 = inlined_call_operand.vmem [shape: bf16[256,128], index: 1, kind: input, shape index: {}]   ;;  %s1760_s2 = inlined_call_operand.vmem [shape: f32[1,128], index: 2, kind: input, shape index: {}]   ;;  %s1761_s3 = inlined_call_operand.vmem [shape: f32[256,1], index: 3, kind: input, shape index: {}]   ;;  %s1762_s4 = inlined_call_operand.hbm [shape: bf16[256,128], index: 4, kind: output, shape index: {}]  }
   0x1   :  { %v1313_v0 = vld [vmem:[%s1759_s1 + $0x40] sm:$0xff]   ;;  %1312 = vset.pattern.permute.xlu1 %v1401_v2  ;;  %1311 = vset.pattern.permute.xlu0 %v1401_v2  ;;  %v1315_v3 = vld [vmem:[%s1759_s1 + $0x48] sm:$0xff]   ;;  %v1317_v5 = vld [vmem:[%s1759_s1 + $0x50] sm:$0xff]  }
   0x2   :  { %v1314_v1 = vld [vmem:[%s1759_s1] sm:$0xff]   ;;  %1179 = vmatprep.subr.bf16.mxu0 %v1313_v0  ;;  %1291 = vmatprep.subr.bf16.mxu1 %v1313_v0  ;;  %v1316_v4 = vld [vmem:[%s1759_s1 + $0x8] sm:$0xff]   ;;  %v1318_v6 = vld [vmem:[%s1759_s1 + $0x10] sm:$0xff]  }
   0x3   :  { %1180 = vmatpush3.bf16.msra.mxu0 %v1314_v1  ;;  %1299 = vmatpush3.bf16.msra.mxu1 %v1314_v1  ;;  %v1319_v7 = vld [vmem:[%s1759_s1 + $0x58] sm:$0xff]   ;;  %v1321_v9 = vld [vmem:[%s1759_s1 + $0x60] sm:$0xff]   ;;  %v1323_v11 = vld [vmem:[%s1759_s1 + $0x68] sm:$0xff]  }
   0x4   :  { %1181 = vmatprep.subr.bf16.mxu0 %v1315_v3  ;;  %1292 = vmatprep.subr.bf16.mxu1 %v1315_v3  ;;  %v1320_v8 = vld [vmem:[%s1759_s1 + $0x18] sm:$0xff]   ;;  %v1322_v10 = vld [vmem:[%s1759_s1 + $0x20] sm:$0xff]   ;;  %v1324_v14 = vld [vmem:[%s1759_s1 + $0x28] sm:$0xff]  }
   0x5   :  { %v1331_v12 = vld [vmem:[%s1758_s0 + $0x4] ss:$8 sps:$4 sm:$0xff]   ;;  %v1325_v15 = vld [vmem:[%s1759_s1 + $0x70] sm:$0xff]   ;;  %v1327_v17 = vld [vmem:[%s1759_s1 + $0x78] sm:$0xff]  }
   0x6   :  { %v1334_v13 = vld [vmem:[%s1758_s0 + $0x84] ss:$8 sps:$4 sm:$0xff]   ;;  %371 = vmatprep.mubr.bf16.mxu0 %v1331_v12  ;;  %v1326_v16 = vld [vmem:[%s1759_s1 + $0x30] sm:$0xff]   ;;  %v1328_v19 = vld [vmem:[%s1759_s1 + $0x38] sm:$0xff]  }
   0x7   :  { %1182 = vmatpush3.bf16.msra.mxu0 %v1316_v4  ;;  %1300 = vmatpush3.bf16.msra.mxu1 %v1316_v4  ;;  %v502_v18 = vld [vmem:[%s1761_s3 + $0x10] sm:$0xff]  ;;  %v500_v20 = vld [vmem:[%s1761_s3] sm:$0xff]  ;;  %v503_v23 = vld [vmem:[%s1761_s3 + $0x18] sm:$0xff] }
   0x8   :  { %1183 = vmatprep.subr.bf16.mxu0 %v1317_v5  ;;  %1293 = vmatprep.subr.bf16.mxu1 %v1317_v5  ;;  %v1329_v21 = vld [vmem:[%s1758_s0] ss:$8 sps:$4 sm:$0xff]   ;;  %v1335_v25 = vld [vmem:[%s1758_s0 + $0x14] ss:$8 sps:$4 sm:$0xff]   ;;  %v1339_v29 = vld [vmem:[%s1758_s0 + $0x10] ss:$8 sps:$4 sm:$0xff]  }
   0x9   :  { %435 = vmatprep.mubr.bf16.mxu1 %v1334_v13  ;;  %545 = vperm.xlu1 %1312, %v502_v18   ;;  %v1332_v22 = vld [vmem:[%s1758_s0 + $0x80] ss:$8 sps:$4 sm:$0xff]   ;;  %v1337_v26 = vld [vmem:[%s1758_s0 + $0x94] ss:$8 sps:$4 sm:$0xff]   ;;  %v1340_v30 = vld [vmem:[%s1758_s0 + $0x90] ss:$8 sps:$4 sm:$0xff]  }
   0xa   :  { %535 = vperm.xlu0 %1311, %v500_v20   ;;  %v501_v24 = vld [vmem:[%s1761_s3 + $0x8] sm:$0xff]  ;;  %v504_v28 = vld [vmem:[%s1761_s3 + $0x20] sm:$0xff]  ;;  %v507_v31 = vld [vmem:[%s1761_s3 + $0x38] sm:$0xff] }
   0xb   :  { %1184 = vmatpush3.bf16.msra.mxu0 %v1318_v6  ;;  %1301 = vmatpush3.bf16.msra.mxu1 %v1318_v6  ;;  %v505_v27 = vld [vmem:[%s1761_s3 + $0x28] sm:$0xff]  ;;  %v506_v32 = vld [vmem:[%s1761_s3 + $0x30] sm:$0xff]  ;;  %v508_v36 = vld [vmem:[%s1761_s3 + $0x40] sm:$0xff] }
   0xc   :  { %1185 = vmatprep.subr.bf16.mxu0 %v1319_v7  ;;  %1294 = vmatprep.subr.bf16.mxu1 %v1319_v7  ;;  %v1341_v33 = vld [vmem:[%s1758_s0 + $0x24] ss:$8 sps:$4 sm:$0xff]   ;;  %v1345_v37 = vld [vmem:[%s1758_s0 + $0x20] ss:$8 sps:$4 sm:$0xff]   ;;  %v511_v39 = vld [vmem:[%s1761_s3 + $0x58] sm:$0xff] }
   0xd   :  { %550 = vperm.xlu1 %1312, %v503_v23   ;;  %v1343_v34 = vld [vmem:[%s1758_s0 + $0xa4] ss:$8 sps:$4 sm:$0xff]   ;;  %v1346_v38 = vld [vmem:[%s1758_s0 + $0xa0] ss:$8 sps:$4 sm:$0xff]   ;;  %v510_v40 = vld [vmem:[%s1761_s3 + $0x50] sm:$0xff] }
   0xe   :  { %540 = vperm.xlu0 %1311, %v501_v24   ;;  %v509_v35 = vld [vmem:[%s1761_s3 + $0x48] sm:$0xff]  ;;  %v1347_v41 = vld [vmem:[%s1758_s0 + $0x34] ss:$8 sps:$4 sm:$0xff]  }
   0xf   :  { %1186 = vmatpush3.bf16.msra.mxu0 %v1320_v8  ;;  %1302 = vmatpush3.bf16.msra.mxu1 %v1320_v8  ;;  %v1349_v42 = vld [vmem:[%s1758_s0 + $0xb4] ss:$8 sps:$4 sm:$0xff]  }
  0x10   :  { %1187 = vmatprep.subr.bf16.mxu0 %v1321_v9  ;;  %1295 = vmatprep.subr.bf16.mxu1 %v1321_v9 }
  0x11   :  { %560 = vperm.xlu1 %1312, %v505_v27  }
  0x12   :  { %555 = vperm.xlu0 %1311, %v504_v28  }
  0x13   :  { %1188 = vmatpush3.bf16.msra.mxu0 %v1322_v10  ;;  %1303 = vmatpush3.bf16.msra.mxu1 %v1322_v10 }
  0x14   :  { %1189 = vmatprep.subr.bf16.mxu0 %v1323_v11  ;;  %1296 = vmatprep.subr.bf16.mxu1 %v1323_v11 }
  0x15   :  { %570 = vperm.xlu1 %1312, %v507_v31  }
  0x16   :  { %565 = vperm.xlu0 %1311, %v506_v32  }
  0x17   :  { %1190 = vmatpush3.bf16.msra.mxu0 %v1324_v14  ;;  %1304 = vmatpush3.bf16.msra.mxu1 %v1324_v14 }
  0x18   :  { %1191 = vmatprep.subr.bf16.mxu0 %v1325_v15  ;;  %1297 = vmatprep.subr.bf16.mxu1 %v1325_v15 }
  0x19   :  { %580 = vperm.xlu1 %1312, %v509_v35  }
  0x1a   :  { %575 = vperm.xlu0 %1311, %v508_v36  }
  0x1b   :  { %1192 = vmatpush3.bf16.msra.mxu0 %v1326_v16  ;;  %1305 = vmatpush3.bf16.msra.mxu1 %v1326_v16 }
  0x1c   :  { %1193 = vmatprep.subr.bf16.mxu0 %v1327_v17  ;;  %1298 = vmatprep.subr.bf16.mxu1 %v1327_v17 }
  0x1f   :  { %1194 = vmatpush3.bf16.msra.mxu0 %v1328_v19  ;;  %1306 = vmatpush3.bf16.msra.mxu1 %v1328_v19 }
  0x22   :  { %372 = vmatmul.mubr.bf16.vlgmr.msra.gmra.mrb[0].mxu0 %v1329_v21  ;;  %436 = vmatmul.mubr.bf16.vlgmr.msra.gmra.mrb[0].mxu1 %v1332_v22 }
  0x23   :  { %379 = vmatprep.mubr.bf16.mxu0 %v1335_v25  ;;  %443 = vmatprep.mubr.bf16.mxu1 %v1337_v26 }
  0x2a   :  { %380 = vmatmul.mubr.bf16.gmra.mrb[4].mxu0 %v1339_v29  ;;  %444 = vmatmul.mubr.bf16.gmra.mrb[4].mxu1 %v1340_v30 }
  0x2b   :  { %387 = vmatprep.mubr.bf16.mxu0 %v1341_v33  ;;  %451 = vmatprep.mubr.bf16.mxu1 %v1343_v34 }
  0x2c   :  { %9 = vsyncpa [#allocation3], 0  ;;  %590 = vperm.xlu1 %1312, %v511_v39   ;;  %585 = vperm.xlu0 %1311, %v510_v40   ;;  %v513_v43 = vld [vmem:[%s1761_s3 + $0x68] sm:$0xff]  ;;  %v512_v44 = vld [vmem:[%s1761_s3 + $0x60] sm:$0xff] }
  0x2d   :  { %v1351_v45 = vld [vmem:[%s1758_s0 + $0x30] ss:$8 sps:$4 sm:$0xff]   ;;  %v1353_v49 = vld [vmem:[%s1758_s0 + $0x44] ss:$8 sps:$4 sm:$0xff]   ;;  %v1357_v53 = vld [vmem:[%s1758_s0 + $0x40] ss:$8 sps:$4 sm:$0xff]  }
  0x2e   :  { %v1352_v46 = vld [vmem:[%s1758_s0 + $0xb0] ss:$8 sps:$4 sm:$0xff]   ;;  %v1355_v50 = vld [vmem:[%s1758_s0 + $0xc4] ss:$8 sps:$4 sm:$0xff]   ;;  %v1358_v54 = vld [vmem:[%s1758_s0 + $0xc0] ss:$8 sps:$4 sm:$0xff]  }
  0x2f   :  { %v515_v47 = vld [vmem:[%s1761_s3 + $0x78] sm:$0xff]  ;;  %v514_v48 = vld [vmem:[%s1761_s3 + $0x70] sm:$0xff]  ;;  %v517_v51 = vld [vmem:[%s1761_s3 + $0x88] sm:$0xff] }
  0x30   :  { %600 = vperm.xlu1 %1312, %v513_v43   ;;  %595 = vperm.xlu0 %1311, %v512_v44   ;;  %v516_v52 = vld [vmem:[%s1761_s3 + $0x80] sm:$0xff]  ;;  %v519_v55 = vld [vmem:[%s1761_s3 + $0x98] sm:$0xff]  ;;  %v518_v56 = vld [vmem:[%s1761_s3 + $0x90] sm:$0xff] }
  0x31   :  { %v1359_v57 = vld [vmem:[%s1758_s0 + $0x54] ss:$8 sps:$4 sm:$0xff]   ;;  %v521_v59 = vld [vmem:[%s1761_s3 + $0xa8] sm:$0xff]  ;;  %v520_v60 = vld [vmem:[%s1761_s3 + $0xa0] sm:$0xff] }
  0x32   :  { %388 = vmatmul.mubr.bf16.gmra.mrb[8].mxu0 %v1345_v37  ;;  %452 = vmatmul.mubr.bf16.gmra.mrb[8].mxu1 %v1346_v38  ;;  %v1361_v58 = vld [vmem:[%s1758_s0 + $0xd4] ss:$8 sps:$4 sm:$0xff]   ;;  %v1363_v61 = vld [vmem:[%s1758_s0 + $0x50] ss:$8 sps:$4 sm:$0xff]   ;;  %v1365_v1 = vld [vmem:[%s1758_s0 + $0x64] ss:$8 sps:$4 sm:$0xff]  }
  0x33   :  { %395 = vmatprep.mubr.bf16.mxu0 %v1347_v41  ;;  %459 = vmatprep.mubr.bf16.mxu1 %v1349_v42  ;;  %v1364_v62 = vld [vmem:[%s1758_s0 + $0xd0] ss:$8 sps:$4 sm:$0xff]   ;;  %v1367_v2 = vld [vmem:[%s1758_s0 + $0xe4] ss:$8 sps:$4 sm:$0xff]   ;;  %v1369_v5 = vld [vmem:[%s1758_s0 + $0x60] ss:$8 sps:$4 sm:$0xff]  }
  0x34   :  { %610 = vperm.xlu1 %1312, %v515_v47   ;;  %605 = vperm.xlu0 %1311, %v514_v48   ;;  %v523_v63 = vld [vmem:[%s1761_s3 + $0xb8] sm:$0xff]  ;;  %v522_v0 = vld [vmem:[%s1761_s3 + $0xb0] sm:$0xff]  ;;  %v525_v3 = vld [vmem:[%s1761_s3 + $0xc8] sm:$0xff] }
  0x35   :  { %v524_v4 = vld [vmem:[%s1761_s3 + $0xc0] sm:$0xff]  ;;  %v527_v7 = vld [vmem:[%s1761_s3 + $0xd8] sm:$0xff]  ;;  %v526_v8 = vld [vmem:[%s1761_s3 + $0xd0] sm:$0xff] }
  0x36   :  { %v1370_v6 = vld [vmem:[%s1758_s0 + $0xe0] ss:$8 sps:$4 sm:$0xff]   ;;  %v1371_v9 = vld [vmem:[%s1758_s0 + $0x74] ss:$8 sps:$4 sm:$0xff]   ;;  %v1375_v13 = vld [vmem:[%s1758_s0 + $0x70] ss:$8 sps:$4 sm:$0xff]  }
  0x37   :  { %v1373_v10 = vld [vmem:[%s1758_s0 + $0xf4] ss:$8 sps:$4 sm:$0xff]   ;;  %v529_v11 = vld [vmem:[%s1761_s3 + $0xe8] sm:$0xff]  ;;  %v528_v12 = vld [vmem:[%s1761_s3 + $0xe0] sm:$0xff] }
  0x38   :  { %620 = vperm.xlu1 %1312, %v517_v51   ;;  %615 = vperm.xlu0 %1311, %v516_v52   ;;  %v1376_v14 = vld [vmem:[%s1758_s0 + $0xf0] ss:$8 sps:$4 sm:$0xff]   ;;  %v1699_v42 = vld [vmem:[%s1760_s2] ss:$0 sm:$0xff]  ;;  %s1402_s2 = smov [#allocation2]  }
  0x39   :  { %v531_v15 = vld [vmem:[%s1761_s3 + $0xf8] sm:$0xff]  ;;  %v530_v16 = vld [vmem:[%s1761_s3 + $0xf0] sm:$0xff]  ;;  %s960_s14 = sshll.u32 %s1402_s2, 4  ;;  %s961_s14 = int_to_ptr.vmem [resolvable:$true] %s960_s14 }
  0x3a   :  { %396 = vmatmul.mubr.bf16.gmra.mrb[12].mxu0 %v1351_v45  ;;  %460 = vmatmul.mubr.bf16.gmra.mrb[12].mxu1 %v1352_v46  ;;  %s1377_s15 = scalar_lea.vmem %s961_s14, 2048  ;;  %p1382_p1 = scmp.lt.s32.totalorder %s961_s14, %s961_s14 }
  0x3b   :  { %403 = vmatprep.mubr.bf16.mxu0 %v1353_v49  ;;  %467 = vmatprep.mubr.bf16.mxu1 %v1355_v50  ;;  %p1378_p0 = scmp.ne.s32.totalorder %s961_s14, %s1377_s15  ;;  %p1383_p2 = scmp.lt.s32.totalorder %s1377_s15, %s1377_s15 }
  0x3c   :  { %630 = vperm.xlu1 %1312, %v519_v55   ;;  %625 = vperm.xlu0 %1311, %v518_v56  }
  0x3d   :  { %p1384_p3 = por %p1383_p2, %p1382_p1 }
  0x3f   :  { %p1385_p4 = pnand %p1384_p3, %p1378_p0 }
  0x40   :  { %640 = vperm.xlu1 %1312, %v521_v59   ;;  %635 = vperm.xlu0 %1311, %v520_v60  }
  0x42   :  { %404 = vmatmul.mubr.bf16.gmra.mrb[16].mxu0 %v1357_v53  ;;  %468 = vmatmul.mubr.bf16.gmra.mrb[16].mxu1 %v1358_v54 }
  0x43   :  { %411 = vmatprep.mubr.bf16.mxu0 %v1359_v57  ;;  %475 = vmatprep.mubr.bf16.mxu1 %v1361_v58 }
  0x44   :  { %650 = vperm.xlu1 %1312, %v523_v63   ;;  %645 = vperm.xlu0 %1311, %v522_v0  }
  0x48   :  { %660 = vperm.xlu1 %1312, %v525_v3   ;;  %655 = vperm.xlu0 %1311, %v524_v4  }
  0x4a   :  { %412 = vmatmul.mubr.bf16.gmra.mrb[20].mxu0 %v1363_v61  ;;  %476 = vmatmul.mubr.bf16.gmra.mrb[20].mxu1 %v1364_v62 }
  0x4b   :  { %419 = vmatprep.mubr.bf16.mxu0 %v1365_v1  ;;  %483 = vmatprep.mubr.bf16.mxu1 %v1367_v2 }
  0x4c   :  { %670 = vperm.xlu1 %1312, %v527_v7   ;;  %665 = vperm.xlu0 %1311, %v526_v8  }
  0x50   :  { %680 = vperm.xlu1 %1312, %v529_v11   ;;  %675 = vperm.xlu0 %1311, %v528_v12  }
  0x52   :  { %420 = vmatmul.mubr.bf16.gmra.mrb[24].mxu0 %v1369_v5  ;;  %484 = vmatmul.mubr.bf16.gmra.mrb[24].mxu1 %v1370_v6 }
  0x53   :  { %427 = vmatprep.mubr.bf16.mxu0 %v1371_v9  ;;  %491 = vmatprep.mubr.bf16.mxu1 %v1373_v10 }
  0x54   :  { %690 = vperm.xlu1 %1312, %v531_v15   ;;  %685 = vperm.xlu0 %1311, %v530_v16  }
  0x5a   :  { %428 = vmatmul.mubr.bf16.gmra.mrb[28].mxu0 %v1375_v13  ;;  %492 = vmatmul.mubr.bf16.gmra.mrb[28].mxu1 %v1376_v14 }
  0x88   :  { %v546_v18 = vpop.permute.xlu1 %545 }
  0x89   :  { %v536_v17 = vpop.permute.xlu0 %535 }
  0x8c   :  { %v1670_v20 = vpop.permute.xlu1 %550 }
  0x8d   :  { %v541_v19 = vpop.permute.xlu0 %540 }
  0x90   :  { %v1674_v22 = vpop.permute.xlu1 %560 }
  0x91   :  { %v1672_v21 = vpop.permute.xlu0 %555 }
  0x94   :  { %v1678_v24 = vpop.permute.xlu1 %570 }
  0x95   :  { %v1676_v23 = vpop.permute.xlu0 %565 }
  0x98   :  { %v1682_v26 = vpop.permute.xlu1 %580 }
  0x99   :  { %v1680_v25 = vpop.permute.xlu0 %575 }
  0xab   :  { %v1684_v27 = vpop.permute.xlu0 %585  ;;  %v1686_v28 = vpop.permute.xlu1 %590 }
  0xaf   :  { %v1688_v29 = vpop.permute.xlu0 %595  ;;  %v1690_v30 = vpop.permute.xlu1 %600 }
  0xb3   :  { %v1692_v31 = vpop.permute.xlu0 %605  ;;  %v1694_v32 = vpop.permute.xlu1 %610 }
  0xb7   :  { %v616_v33 = vpop.permute.xlu0 %615  ;;  %v621_v49 = vpop.permute.xlu1 %620 }
  0xbb   :  { %v626_v54 = vpop.permute.xlu0 %625  ;;  %v631_v13 = vpop.permute.xlu1 %630 }
  0xbf   :  { %v636_v14 = vpop.permute.xlu0 %635 }
  0xf5   :  { %v1195_v34 = vpop.f32.mrb[0].mxu0  ;;  %v1243_v35 = vpop.f32.mrb[0].mxu1 }
  0xf6   :  { %v1196_v36 = vpop.f32.mrb[1].mxu0  ;;  %v1244_v37 = vpop.f32.mrb[1].mxu1 }
  0xf7   :  { %v1197_v38 = vadd.f32 %v1196_v36, %v1195_v34  ;;  %v1245_v39 = vadd.f32 %v1244_v37, %v1243_v35  ;;  %v1198_v40 = vpop.f32.mrb[2].mxu0  ;;  %v1246_v41 = vpop.f32.mrb[2].mxu1 }
  0xf8   :  { %v1199_v43 = vpop.f32.mrb[3].mxu0  ;;  %v1247_v44 = vpop.f32.mrb[3].mxu1 }
  0xf9   :  { %v693_v45 = vmul.f32 %v1197_v38, %v536_v17  ;;  %v709_v46 = vmul.f32 %v1245_v39, %v616_v33  ;;  %v1200_v47 = vadd.f32 %v1199_v43, %v1198_v40  ;;  %v1248_v48 = vadd.f32 %v1247_v44, %v1246_v41 }
  0xfb   :  { %v731_v50 = vadd.f32 %v1699_v42, %v693_v45  ;;  %v747_v51 = vadd.f32 %v1699_v42, %v709_v46  ;;  %v694_v52 = vmul.f32 %v1200_v47, %v541_v19  ;;  %v710_v53 = vmul.f32 %v1248_v48, %v621_v49 }
  0xfd   :  { %v732_v55 = vadd.f32 %v1699_v42, %v694_v52  ;;  %v748_v56 = vadd.f32 %v1699_v42, %v710_v53  ;;  %v1201_v57 = vpop.f32.mrb[4].mxu0  ;;  %v1249_v58 = vpop.f32.mrb[4].mxu1  ;;  %v763_v59 = vmax.f32 %v731_v50, 0.0  ;;  %v779_v60 = vmax.f32 %v747_v51, 0.0 }
  0xfe   :  { %v1202_v61 = vpop.f32.mrb[5].mxu0  ;;  %v1250_v62 = vpop.f32.mrb[5].mxu1 }
  0xff   :  { %v764_v63 = vmax.f32 %v732_v55, 0.0  ;;  %v780_v0 = vmax.f32 %v748_v56, 0.0  ;;  %v1203_v1 = vadd.f32 %v1202_v61, %v1201_v57  ;;  %v1251_v2 = vadd.f32 %v1250_v62, %v1249_v58  ;;  %v1204_v3 = vpop.f32.mrb[6].mxu0  ;;  %v1252_v4 = vpop.f32.mrb[6].mxu1 }
 0x100   :  { %v1205_v5 = vpop.f32.mrb[7].mxu0  ;;  %v1253_v6 = vpop.f32.mrb[7].mxu1 }
 0x101   :  { %v1087_v7 = vpack.c.bf16 %v764_v63, %v763_v59  ;;  %v1127_v8 = vpack.c.bf16 %v780_v0, %v779_v60  ;;  %v695_v9 = vmul.f32 %v1203_v1, %v546_v18  ;;  %v711_v10 = vmul.f32 %v1251_v2, %v626_v54  ;;  %v641_v52 = vpop.permute.xlu1 %640  ;;  %v646_v59 = vpop.permute.xlu0 %645 }
 0x102   :  { %v1206_v11 = vadd.f32 %v1205_v5, %v1204_v3  ;;  %v1254_v12 = vadd.f32 %v1253_v6, %v1252_v4 }
 0x103   :  { %1088 = vst [vmem:[#allocation2] sm:$0xff] %v1087_v7   ;;  %1171 = vst [vmem:[#allocation2 + $0x40] sm:$0xff] %v1127_v8   ;;  %v733_v15 = vadd.f32 %v1699_v42, %v695_v9  ;;  %v749_v16 = vadd.f32 %v1699_v42, %v711_v10 }
 0x104   :  { %v696_v17 = vmul.f32 %v1206_v11, %v1670_v20  ;;  %v712_v19 = vmul.f32 %v1254_v12, %v631_v13 }
 0x105   :  { %v1207_v33 = vpop.f32.mrb[8].mxu0  ;;  %v1255_v34 = vpop.f32.mrb[8].mxu1  ;;  %v765_v43 = vmax.f32 %v733_v15, 0.0  ;;  %v781_v44 = vmax.f32 %v749_v16, 0.0 }
 0x106   :  { %v734_v35 = vadd.f32 %v1699_v42, %v696_v17  ;;  %v750_v18 = vadd.f32 %v1699_v42, %v712_v19  ;;  %v1208_v36 = vpop.f32.mrb[9].mxu0  ;;  %v1256_v37 = vpop.f32.mrb[9].mxu1 }
 0x107   :  { %v1209_v38 = vadd.f32 %v1208_v36, %v1207_v33  ;;  %v1257_v39 = vadd.f32 %v1256_v37, %v1255_v34  ;;  %v1210_v40 = vpop.f32.mrb[10].mxu0  ;;  %v1258_v41 = vpop.f32.mrb[10].mxu1 }
 0x108   :  { %v766_v45 = vmax.f32 %v734_v35, 0.0  ;;  %v782_v46 = vmax.f32 %v750_v18, 0.0  ;;  %v1211_v47 = vpop.f32.mrb[11].mxu0  ;;  %v1259_v48 = vpop.f32.mrb[11].mxu1 }
 0x109   :  { %v697_v20 = vmul.f32 %v1209_v38, %v1672_v21  ;;  %v713_v49 = vmul.f32 %v1257_v39, %v636_v14  ;;  %v1212_v50 = vadd.f32 %v1211_v47, %v1210_v40  ;;  %v1260_v51 = vadd.f32 %v1259_v48, %v1258_v41  ;;  %v651_v16 = vpop.permute.xlu1 %650  ;;  %v656_v17 = vpop.permute.xlu0 %655 }
 0x10a   :  { %v1092_v53 = vpack.c.bf16 %v766_v45, %v765_v43  ;;  %v1132_v54 = vpack.c.bf16 %v782_v46, %v781_v44 }
 0x10b   :  { %v735_v55 = vadd.f32 %v1699_v42, %v697_v20  ;;  %v751_v56 = vadd.f32 %v1699_v42, %v713_v49  ;;  %v698_v57 = vmul.f32 %v1212_v50, %v1674_v22  ;;  %v714_v58 = vmul.f32 %v1260_v51, %v641_v52 }
 0x10c   :  { %1164 = vst [vmem:[#allocation2 + $0x8] sm:$0xff] %v1092_v53   ;;  %1172 = vst [vmem:[#allocation2 + $0x48] sm:$0xff] %v1132_v54  }
 0x10d   :  { %v736_v60 = vadd.f32 %v1699_v42, %v698_v57  ;;  %v752_v21 = vadd.f32 %v1699_v42, %v714_v58  ;;  %v1213_v61 = vpop.f32.mrb[12].mxu0  ;;  %v1261_v62 = vpop.f32.mrb[12].mxu1  ;;  %v767_v63 = vmax.f32 %v735_v55, 0.0  ;;  %v783_v0 = vmax.f32 %v751_v56, 0.0 }
 0x10e   :  { %v1214_v1 = vpop.f32.mrb[13].mxu0  ;;  %v1262_v2 = vpop.f32.mrb[13].mxu1 }
 0x10f   :  { %v768_v3 = vmax.f32 %v736_v60, 0.0  ;;  %v784_v4 = vmax.f32 %v752_v21, 0.0  ;;  %v1215_v5 = vadd.f32 %v1214_v1, %v1213_v61  ;;  %v1263_v6 = vadd.f32 %v1262_v2, %v1261_v62  ;;  %v1216_v7 = vpop.f32.mrb[14].mxu0  ;;  %v1264_v22 = vpop.f32.mrb[14].mxu1 }
 0x110   :  { %v1217_v8 = vpop.f32.mrb[15].mxu0  ;;  %v1265_v9 = vpop.f32.mrb[15].mxu1 }
 0x111   :  { %v1097_v10 = vpack.c.bf16 %v768_v3, %v767_v63  ;;  %v1137_v11 = vpack.c.bf16 %v784_v4, %v783_v0  ;;  %v699_v12 = vmul.f32 %v1215_v5, %v1676_v23  ;;  %v715_v13 = vmul.f32 %v1263_v6, %v646_v59  ;;  %v661_v53 = vpop.permute.xlu1 %660  ;;  %v666_v60 = vpop.permute.xlu0 %665 }
 0x112   :  { %v1218_v14 = vadd.f32 %v1217_v8, %v1216_v7  ;;  %v1266_v15 = vadd.f32 %v1265_v9, %v1264_v22 }
 0x113   :  { %1165 = vst [vmem:[#allocation2 + $0x10] sm:$0xff] %v1097_v10   ;;  %1173 = vst [vmem:[#allocation2 + $0x50] sm:$0xff] %v1137_v11   ;;  %v737_v19 = vadd.f32 %v1699_v42, %v699_v12  ;;  %v753_v33 = vadd.f32 %v1699_v42, %v715_v13 }
 0x114   :  { %v700_v34 = vmul.f32 %v1218_v14, %v1678_v24  ;;  %v716_v35 = vmul.f32 %v1266_v15, %v651_v16 }
 0x115   :  { %v1219_v18 = vpop.f32.mrb[16].mxu0  ;;  %v1267_v36 = vpop.f32.mrb[16].mxu1  ;;  %v769_v45 = vmax.f32 %v737_v19, 0.0  ;;  %v785_v46 = vmax.f32 %v753_v33, 0.0 }
 0x116   :  { %v738_v37 = vadd.f32 %v1699_v42, %v700_v34  ;;  %v754_v23 = vadd.f32 %v1699_v42, %v716_v35  ;;  %v1220_v38 = vpop.f32.mrb[17].mxu0  ;;  %v1268_v39 = vpop.f32.mrb[17].mxu1 }
 0x117   :  { %v1221_v40 = vadd.f32 %v1220_v38, %v1219_v18  ;;  %v1269_v41 = vadd.f32 %v1268_v39, %v1267_v36  ;;  %v1222_v43 = vpop.f32.mrb[18].mxu0  ;;  %v1270_v44 = vpop.f32.mrb[18].mxu1 }
 0x118   :  { %v770_v47 = vmax.f32 %v738_v37, 0.0  ;;  %v786_v48 = vmax.f32 %v754_v23, 0.0  ;;  %v1223_v20 = vpop.f32.mrb[19].mxu0  ;;  %v1271_v49 = vpop.f32.mrb[19].mxu1 }
 0x119   :  { %v701_v24 = vmul.f32 %v1221_v40, %v1680_v25  ;;  %v717_v50 = vmul.f32 %v1269_v41, %v656_v17  ;;  %v1224_v51 = vadd.f32 %v1223_v20, %v1222_v43  ;;  %v1272_v52 = vadd.f32 %v1271_v49, %v1270_v44  ;;  %v671_v15 = vpop.permute.xlu1 %670  ;;  %v676_v16 = vpop.permute.xlu0 %675 }
 0x11a   :  { %v1102_v54 = vpack.c.bf16 %v770_v47, %v769_v45  ;;  %v1142_v55 = vpack.c.bf16 %v786_v48, %v785_v46 }
 0x11b   :  { %v739_v56 = vadd.f32 %v1699_v42, %v701_v24  ;;  %v755_v57 = vadd.f32 %v1699_v42, %v717_v50  ;;  %v702_v58 = vmul.f32 %v1224_v51, %v1682_v26  ;;  %v718_v59 = vmul.f32 %v1272_v52, %v661_v53 }
 0x11c   :  { %1166 = vst [vmem:[#allocation2 + $0x18] sm:$0xff] %v1102_v54   ;;  %1174 = vst [vmem:[#allocation2 + $0x58] sm:$0xff] %v1142_v55  }
 0x11d   :  { %v740_v21 = vadd.f32 %v1699_v42, %v702_v58  ;;  %v756_v25 = vadd.f32 %v1699_v42, %v718_v59  ;;  %v1225_v61 = vpop.f32.mrb[20].mxu0  ;;  %v1273_v62 = vpop.f32.mrb[20].mxu1  ;;  %v771_v63 = vmax.f32 %v739_v56, 0.0  ;;  %v787_v0 = vmax.f32 %v755_v57, 0.0 }
 0x11e   :  { %v1226_v1 = vpop.f32.mrb[21].mxu0  ;;  %v1274_v2 = vpop.f32.mrb[21].mxu1 }
 0x11f   :  { %v772_v3 = vmax.f32 %v740_v21, 0.0  ;;  %v788_v4 = vmax.f32 %v756_v25, 0.0  ;;  %v1227_v5 = vadd.f32 %v1226_v1, %v1225_v61  ;;  %v1275_v6 = vadd.f32 %v1274_v2, %v1273_v62  ;;  %v1228_v7 = vpop.f32.mrb[22].mxu0  ;;  %v1276_v26 = vpop.f32.mrb[22].mxu1 }
 0x120   :  { %v1229_v22 = vpop.f32.mrb[23].mxu0  ;;  %v1277_v8 = vpop.f32.mrb[23].mxu1 }
 0x121   :  { %v1107_v9 = vpack.c.bf16 %v772_v3, %v771_v63  ;;  %v1147_v10 = vpack.c.bf16 %v788_v4, %v787_v0  ;;  %v703_v11 = vmul.f32 %v1227_v5, %v1684_v27  ;;  %v719_v12 = vmul.f32 %v1275_v6, %v666_v60  ;;  %v681_v50 = vpop.permute.xlu1 %680  ;;  %v686_v57 = vpop.permute.xlu0 %685 }
 0x122   :  { %v1230_v13 = vadd.f32 %v1229_v22, %v1228_v7  ;;  %v1278_v14 = vadd.f32 %v1277_v8, %v1276_v26 }
 0x123   :  { %1167 = vst [vmem:[#allocation2 + $0x20] sm:$0xff] %v1107_v9   ;;  %1175 = vst [vmem:[#allocation2 + $0x60] sm:$0xff] %v1147_v10   ;;  %v741_v17 = vadd.f32 %v1699_v42, %v703_v11  ;;  %v757_v19 = vadd.f32 %v1699_v42, %v719_v12 }
 0x124   :  { %v704_v33 = vmul.f32 %v1230_v13, %v1686_v28  ;;  %v720_v34 = vmul.f32 %v1278_v14, %v671_v15 }
 0x125   :  { %v1231_v35 = vpop.f32.mrb[24].mxu0  ;;  %v1279_v18 = vpop.f32.mrb[24].mxu1  ;;  %v773_v43 = vmax.f32 %v741_v17, 0.0  ;;  %v789_v44 = vmax.f32 %v757_v19, 0.0 }
 0x126   :  { %v742_v36 = vadd.f32 %v1699_v42, %v704_v33  ;;  %v758_v27 = vadd.f32 %v1699_v42, %v720_v34  ;;  %v1232_v37 = vpop.f32.mrb[25].mxu0  ;;  %v1280_v23 = vpop.f32.mrb[25].mxu1 }
 0x127   :  { %v1233_v38 = vadd.f32 %v1232_v37, %v1231_v35  ;;  %v1281_v39 = vadd.f32 %v1280_v23, %v1279_v18  ;;  %v1234_v40 = vpop.f32.mrb[26].mxu0  ;;  %v1282_v41 = vpop.f32.mrb[26].mxu1 }
 0x128   :  { %v774_v45 = vmax.f32 %v742_v36, 0.0  ;;  %v790_v46 = vmax.f32 %v758_v27, 0.0  ;;  %v1235_v47 = vpop.f32.mrb[27].mxu0  ;;  %v1283_v48 = vpop.f32.mrb[27].mxu1 }
 0x129   :  { %v705_v28 = vmul.f32 %v1233_v38, %v1688_v29  ;;  %v721_v20 = vmul.f32 %v1281_v39, %v676_v16  ;;  %v1236_v49 = vadd.f32 %v1235_v47, %v1234_v40  ;;  %v1284_v24 = vadd.f32 %v1283_v48, %v1282_v41  ;;  %v691_v10 = vpop.permute.xlu1 %690 }
 0x12a   :  { %v1112_v51 = vpack.c.bf16 %v774_v45, %v773_v43  ;;  %v1152_v52 = vpack.c.bf16 %v790_v46, %v789_v44 }
 0x12b   :  { %v743_v53 = vadd.f32 %v1699_v42, %v705_v28  ;;  %v759_v54 = vadd.f32 %v1699_v42, %v721_v20  ;;  %v706_v55 = vmul.f32 %v1236_v49, %v1690_v30  ;;  %v722_v56 = vmul.f32 %v1284_v24, %v681_v50 }
 0x12c   :  { %1168 = vst [vmem:[#allocation2 + $0x28] sm:$0xff] %v1112_v51   ;;  %1176 = vst [vmem:[#allocation2 + $0x68] sm:$0xff] %v1152_v52  }
 0x12d   :  { %v744_v58 = vadd.f32 %v1699_v42, %v706_v55  ;;  %v760_v29 = vadd.f32 %v1699_v42, %v722_v56  ;;  %v1237_v59 = vpop.f32.mrb[28].mxu0  ;;  %v1285_v60 = vpop.f32.mrb[28].mxu1  ;;  %v775_v21 = vmax.f32 %v743_v53, 0.0  ;;  %v791_v25 = vmax.f32 %v759_v54, 0.0 }
 0x12e   :  { %v1238_v61 = vpop.f32.mrb[29].mxu0  ;;  %v1286_v62 = vpop.f32.mrb[29].mxu1 }
 0x12f   :  { %v776_v63 = vmax.f32 %v744_v58, 0.0  ;;  %v792_v0 = vmax.f32 %v760_v29, 0.0  ;;  %v1239_v1 = vadd.f32 %v1238_v61, %v1237_v59  ;;  %v1287_v2 = vadd.f32 %v1286_v62, %v1285_v60  ;;  %v1240_v3 = vpop.f32.mrb[30].mxu0  ;;  %v1288_v30 = vpop.f32.mrb[30].mxu1 }
 0x130   :  { %v1241_v4 = vpop.f32.mrb[31].mxu0  ;;  %v1289_v5 = vpop.f32.mrb[31].mxu1 }
 0x131   :  { %v1117_v6 = vpack.c.bf16 %v776_v63, %v775_v21  ;;  %v1157_v7 = vpack.c.bf16 %v792_v0, %v791_v25  ;;  %v707_v26 = vmul.f32 %v1239_v1, %v1692_v31  ;;  %v723_v22 = vmul.f32 %v1287_v2, %v686_v57 }
 0x132   :  { %v1242_v8 = vadd.f32 %v1241_v4, %v1240_v3  ;;  %v1290_v9 = vadd.f32 %v1289_v5, %v1288_v30 }
 0x133   :  { %1169 = vst [vmem:[#allocation2 + $0x30] sm:$0xff] %v1117_v6   ;;  %1177 = vst [vmem:[#allocation2 + $0x70] sm:$0xff] %v1157_v7   ;;  %v745_v11 = vadd.f32 %v1699_v42, %v707_v26  ;;  %v761_v12 = vadd.f32 %v1699_v42, %v723_v22 }
 0x134   :  { %v708_v13 = vmul.f32 %v1242_v8, %v1694_v32  ;;  %v724_v14 = vmul.f32 %v1290_v9, %v691_v10 }
 0x135   :  { %v777_v31 = vmax.f32 %v745_v11, 0.0  ;;  %v793_v17 = vmax.f32 %v761_v12, 0.0 }
 0x136   :  { %v746_v15 = vadd.f32 %v1699_v42, %v708_v13  ;;  %v762_v16 = vadd.f32 %v1699_v42, %v724_v14 }
 0x138   :  { %v778_v19 = vmax.f32 %v746_v15, 0.0  ;;  %v794_v33 = vmax.f32 %v762_v16, 0.0 }
 0x13a   :  { %v1122_v34 = vpack.c.bf16 %v778_v19, %v777_v31  ;;  %v1162_v35 = vpack.c.bf16 %v794_v33, %v793_v17 }
 0x13c   :  { %1170 = vst [vmem:[#allocation2 + $0x38] sm:$0xff] %v1122_v34   ;;  %1178 = vst [vmem:[#allocation2 + $0x78] sm:$0xff] %v1162_v35  }
 0x13d   :  { %1388 = shalt.err (!%p1385_p4)
}
 0x13e   :  { %s1389_s18 = scalar_lea.hbm %s1762_s4, 2048 }
 0x13f   :  { %p1390_p5 = scmp.ne.s32.totalorder %s1762_s4, %s1389_s18  ;;  %p1393_p6 = scmp.lt.u32.totalorder %s1389_s18, %s1762_s4 }
 0x141   :  { %p1395_p7 = pnand %p1393_p6, %p1390_p5 }
 0x143   :  { %1398 = shalt.err (!%p1395_p7)
}
 0x144   :  { %s1403_s23 = smov 64   ;;  %s1404_s24 = smov 4  }
 0x145   :  { %966 = dma.vmem_to_hbm [thread:$0]  %s961_s14, 2048, %s1762_s4, [#allocation3], %s1403_s23, %s1403_s23, %s1404_s24  }
 0x146   :  { %1399 = dma.done.wait [#allocation3], 2048  }
 0x147   :  { %1400 = vsyncadd [#allocation3], 4294965248 }
 0x148   :  { %970 = vsyncpa [#allocation3], 1 }

</bundles_post_ra>
